<compile_context>
chip_gen: v6e
topology: v6e:2x2x1
jax: 0.10.0
libtpu: 0.0.40
codegen_flags: <defaults>
</compile_context>

<pallas_src>
import math

import jax
import jax.numpy as jnp
from jax.experimental import pallas as pl
from jax.experimental.pallas import tpu as pltpu


def _rte_add_kernel(vec_ref, x_ref, o_ref):
    """Pure stream broadcast-add.

    vec_ref : (Bb, 1,  WC)  pre-projected, pre-tiled temporal embedding
    x_ref   : (Bb, Hb, WC)  feature tile (W folded into channel axis)
    o_ref   : (Bb, Hb, WC)  output tile
    """
    o_ref[...] = x_ref[...] + vec_ref[...]


def _largest_divisor(n, cap, multiple_of=1):
    """Largest d with d | n, d <= cap, d % multiple_of == 0 (or None)."""
    best = None
    for d in range(1, n + 1):
        if n % d == 0 and d <= cap and d % multiple_of == 0:
            best = d
    return best


def rte_history(x, dts, emb_table, w, bias, rte_ratio):
    """x: [B, L, H, W, C], dts: [B, L] int -> [B, L, H, W, C]."""
    B, L, H, W, C = x.shape
    BL = B * L
    WC = W * C
    itemsize = jnp.dtype(x.dtype).itemsize

    # ---- Hoisted projection: one tiny batched matmul in plain XLA.
    idx = (dts.astype(jnp.int32) * rte_ratio).reshape(-1)                 # (BL,)
    e_sel = jnp.take(emb_table, idx, axis=0).astype(jnp.float32)          # (BL, C)
    vec = e_sel @ w.T.astype(jnp.float32) + bias.astype(jnp.float32)      # (BL, C)
    # Pre-tile along W so the kernel's trailing axis is lane-dense (width WC),
    # and pre-cast once to x.dtype.
    vec_t = jnp.tile(vec, (1, W)).reshape(BL, 1, WC).astype(x.dtype)

    # ---- Lane-dense layout: fold W into the channel axis.
    x3 = x.reshape(BL, H, WC)

    # ---- Block sizing: target ~2 MiB per x tile.  With double-buffered input
    # and output streams this stays under the 16 MiB v5e scoped-VMEM default
    # (and well under v6e/v7x defaults).
    target_bytes = 2 * 1024 * 1024
    slab_bytes = H * WC * itemsize            # one (b, l) slab
    if slab_bytes <= target_bytes:
        hb = H
        cap = max(1, target_bytes // slab_bytes)
        if BL >= 2:
            # Keep >= 2 steps on the leading "parallel" axis so megacore
            # sharding (v7x 2-TC) stays available.
            cap = max(1, min(cap, BL // 2))
        bb = _largest_divisor(BL, cap) or 1
    else:
        bb = 1
        cap_h = max(1, target_bytes // (WC * itemsize))
        # Hb must be a multiple of 8 (sublane rule) or equal to H.
        hb = _largest_divisor(H, cap_h, multiple_of=8) or H

    grid = (BL // bb, pl.cdiv(H, hb))

    out = pl.pallas_call(
        _rte_add_kernel,
        out_shape=jax.ShapeDtypeStruct((BL, H, WC), x.dtype),
        grid_spec=pltpu.PrefetchScalarGridSpec(
            num_scalar_prefetch=0,
            grid=grid,
            in_specs=[
                pl.BlockSpec((bb, 1, WC), lambda i, j: (i, 0, 0)),
                pl.BlockSpec((bb, hb, WC), lambda i, j: (i, j, 0)),
            ],
            out_specs=pl.BlockSpec((bb, hb, WC), lambda i, j: (i, j, 0)),
        ),
        compiler_params=pltpu.CompilerParams(
            dimension_semantics=("parallel", "parallel")),
    )(vec_t, x3)

    return out.reshape(B, L, H, W, C)


def make_sinusoid_table(max_len, n_hid):
    """Deterministic sinusoidal embedding table, matching the PyTorch init."""
    position = jnp.arange(max_len, dtype=jnp.float32)[:, None]            # (max_len, 1)
    div_term = jnp.exp(
        jnp.arange(0, n_hid, 2, dtype=jnp.float32) * (-math.log(10000.0) / n_hid)
    )                                                                     # (n_hid/2,)
    tab = jnp.zeros((max_len, n_hid), dtype=jnp.float32)
    tab = tab.at[:, 0::2].set(jnp.sin(position * div_term) / math.sqrt(n_hid))
    tab = tab.at[:, 1::2].set(jnp.cos(position * div_term) / math.sqrt(n_hid))
    return tab


if __name__ == "__main__":
    # Small, module-consistent shapes.
    B, L, H, W, C = 2, 3, 8, 16, 32
    RTE_RATIO = 2
    MAX_LEN = 100

    key = jax.random.PRNGKey(0)
    kx, kd, kw, kb = jax.random.split(key, 4)

    x = jax.random.normal(kx, (B, L, H, W, C), dtype=jnp.float32)
    # Time offsets; index into the table is dts * RTE_ratio, keep it < MAX_LEN.
    dts = jax.random.randint(kd, (B, L), 0, MAX_LEN // RTE_RATIO, dtype=jnp.int32)

    # Deterministic parameter init (nn.Linear-style uniform).
    bound = 1.0 / math.sqrt(C)
    w_lin = jax.random.uniform(kw, (C, C), jnp.float32, -bound, bound)   # (out, in)
    b_lin = jax.random.uniform(kb, (C,), jnp.float32, -bound, bound)

    emb_table = make_sinusoid_table(MAX_LEN, C)

    out = rte_history(x, dts, emb_table, w_lin, b_lin, RTE_RATIO)
    out = jax.block_until_ready(out)

    # Pure-JAX reference (same math path) for a correctness sanity check.
    e_ref = jnp.take(emb_table, dts.reshape(-1) * RTE_RATIO, axis=0)      # (B*L, C)
    vec_ref = (e_ref @ w_lin.T + b_lin).reshape(B, L, 1, 1, C)
    ref = x + vec_ref
    assert out.shape == (B, L, H, W, C)
    assert jnp.allclose(out, ref, atol=1e-5, rtol=1e-5)

    print("KERNEL_OK")
</pallas_src>

<mosaic_0001>
module attributes {stable_mosaic.version = 11 : i64} {
  func.func @_rte_add_kernel(%arg0: i32, %arg1: i32, %arg2: memref<3x1x512xf32, #tpu.memory_space<vmem>>, %arg3: memref<3x8x512xf32, #tpu.memory_space<vmem>>, %arg4: memref<3x8x512xf32, #tpu.memory_space<vmem>>) attributes {dimension_semantics = [#tpu.dimension_semantics<parallel>, #tpu.dimension_semantics<parallel>], iteration_bounds = array<i64: 2, 1>, scalar_prefetch = 0 : i64, scratch_operands = 0 : i64, tpu.core_type = #tpu.core_type<tc>, window_params = [{transform_indices = @transform_0, window_bounds = array<i64: 3, 1, 512>}, {transform_indices = @transform_1, window_bounds = array<i64: 3, 8, 512>}, {transform_indices = @transform_2, window_bounds = array<i64: 3, 8, 512>}]} {
    %c0 = arith.constant 0 : index
    %c0_0 = arith.constant 0 : index
    %c0_1 = arith.constant 0 : index
    %0 = vector.load %arg3[%c0, %c0_0, %c0_1] : memref<3x8x512xf32, #tpu.memory_space<vmem>>, vector<3x8x512xf32>
    %c0_2 = arith.constant 0 : index
    %c0_3 = arith.constant 0 : index
    %c0_4 = arith.constant 0 : index
    %1 = vector.load %arg2[%c0_2, %c0_3, %c0_4] : memref<3x1x512xf32, #tpu.memory_space<vmem>>, vector<3x1x512xf32>
    %2 = vector.broadcast %1 : vector<3x1x512xf32> to vector<3x8x512xf32>
    %3 = arith.addf %0, %2 : vector<3x8x512xf32>
    %c0_5 = arith.constant 0 : index
    %c0_6 = arith.constant 0 : index
    %c0_7 = arith.constant 0 : index
    %4 = vector.load %arg4[%c0_5, %c0_6, %c0_7] : memref<3x8x512xf32, #tpu.memory_space<vmem>>, vector<3x8x512xf32>
    tpu.vector_store %arg4[%c0_5, %c0_6, %c0_7], %3 {strides = array<i32>} : memref<3x8x512xf32, #tpu.memory_space<vmem>>, vector<3x8x512xf32>,
    return
  }
  func.func @transform_0(%arg0: i32, %arg1: i32) -> (i32, i32, i32) {
    %c0_i32 = arith.constant 0 : i32
    %c0_i32_0 = arith.constant 0 : i32
    %c0_i32_1 = arith.constant 0 : i32
    return %arg0, %c0_i32, %c0_i32_0 : i32, i32, i32
  }
  func.func @transform_1(%arg0: i32, %arg1: i32) -> (i32, i32, i32) {
    %c0_i32 = arith.constant 0 : i32
    %c0_i32_0 = arith.constant 0 : i32
    return %arg0, %arg1, %c0_i32 : i32, i32, i32
  }
  func.func @transform_2(%arg0: i32, %arg1: i32) -> (i32, i32, i32) {
    %c0_i32 = arith.constant 0 : i32
    %c0_i32_0 = arith.constant 0 : i32
    return %arg0, %arg1, %c0_i32 : i32, i32, i32
  }
}

</mosaic_0001>

<bundles_post_ra>
// kernel: tpu_custom_call.1
= control target key start
LH: loop header
LB: loop body
LE: loop exit
PB: predicated region body
PF: predicated region fallthrough
CT: control target
= control target key end

     0   :  { %7 = vsyncpa [#allocation3], 0  ;;  %s933_s0 = inlined_call_operand.hbm [shape: f32[6,1,512], index: 0, kind: input, shape index: {}]   ;;  %s934_s1 = inlined_call_operand.hbm [shape: f32[6,8,512], index: 1, kind: input, shape index: {}]   ;;  %s935_s2 = inlined_call_operand.hbm [shape: f32[6,8,512], index: 2, kind: output, shape index: {}]  }
   0x1   :  { %9 = vsyncpa [#allocation3 + $0x1], 0 }
   0x2   :  { %10 = vsyncpa [#allocation6], 0 }
   0x3   :  { %12 = vsyncpa [#allocation6 + $0x1], 0 }
   0x4   :  { %13 = vsyncpa [#allocation4], 0 }
   0x5   :  { %15 = vsyncpa [#allocation4 + $0x1], 0  ;;  %s719_s9 = smov 0   ;;  %s721_s10 = smov 0  }
   0x6   :  { %s723_s11 = smov 0   ;;  %s725_s12 = smov 0  }
   0x7   :  { %s727_s13 = smov 0   ;;  %s729_s14 = smov 0  }
   0x8 LB: > { %s454_s15 = sadd.s32 4294967295, %s693_s14   ;;  %s455_s16 = sadd.s32 4294967294, %s693_s14   ;;  %s693_s14 = sphi %s729_s14, %s21_s14   ;;  %s689_s13 = sphi %s727_s13, %s946_s13   ;;  %s685_s12 = sphi %s725_s12, %s945_s12   ;;  %s681_s11 = sphi %s723_s11, %s944_s11   ;;  %s677_s10 = sphi %s721_s10, %s943_s10   ;;  %s673_s9 = sphi %s719_s9, %s942_s9  }
   0x9   : > { %s33_s17 = sadd.s32 1, %s689_s13  ;;  %s40_s18 = sadd.s32 1, %s681_s11 }
   0xa   : > { %p35_p0 = scmp.ge.s32.totalorder %s33_s17, 2  ;;  %p47_p1 = scmp.ne.s32.totalorder %s681_s11, %s677_s10 }
   0xb   : > { %p48_p2 = scmp.eq.s32.totalorder %s693_s14, 0  ;;  %p53_p3 = scmp.ne.s32.totalorder %s677_s10, %s673_s9 }
   0xc   : > { %s948_s17 = smov (%p35_p0, %s33_s17), 0  ;;  %p54_p5 = scmp.eq.s32.totalorder %s454_s15, 0 }
   0xd   : > { %p760_p4 = por %p48_p2, %p47_p1  ;;  %s37_s20 = ssub.s32 %s689_s13, %s948_s17 }
   0xe   : > { %p107_p6 = scmp.eq.s32.totalorder %s454_s15, 1  ;;  %p38_p7 = scmp.eq.s32.totalorder %s37_s20, 0 }
   0xf   : > { %p766_p8 = por %p54_p5, %p53_p3  ;;  %p113_p10 = scmp.eq.s32.totalorder %s455_s16, 1 }
  0x10   : > { %p770_p9 = por %p107_p6, %p47_p1  ;;  %p457_p12 = scmp.ge.s32.totalorder %s693_s14, 2 }
  0x11   : > { %s775_s23 = scalar_select %p38_p7, %s681_s11, %s40_s18  }
  0x12   : > { %p777_p11 = por %p113_p10, %p53_p3  ;;  %p497_p13 = scmp.lt.s32.totalorder %s693_s14, 2 }
  0x13   : > { %s784_s25 = sand.u32 1, %s681_s11   ;;  %s473_s27 = smul.u32 192, %s689_s13 }
  0x14   : > { %s476_s26 = smul.u32 12, %s784_s25  ;;  %p790_p0 = pnand %p497_p13, %p760_p4 }
  0x15   : > { %s144_s3 = scalar_lea.hbm %s933_s0, %s473_s27  ;;  %p462_p1 = scmp.ge.s32.totalorder %s693_s14, 1 }
  0x16   : > { %s137_s4 = scalar_lea.vmem [#allocation2], %s476_s26  ;;  %s134_s6 = scalar_lea.sflag [#allocation3], %s784_s25 }
  0x17   : > { %s145_s5 = sshll.u32 %s137_s4, 4  ;;  %p555_p2 = pneg %p790_p0  ;;  %s146_s5 = int_to_ptr.vmem [resolvable:$true] %s145_s5 }
  0x18   : > { %s566_s7 = scalar_lea.vmem %s146_s5, 192  ;;  %s695_s8 = smov [#allocation2]  }
  0x19   : > { %p567_p3 = scmp.ne.s32.totalorder %s146_s5, %s566_s7  ;;  %s571_s15 = sshll.u32 %s695_s8, 4  ;;  %s572_s15 = int_to_ptr.vmem [resolvable:$false] %s571_s15 }
  0x1a   : > { %s573_s16 = scalar_lea.vmem %s572_s15, 384  ;;  %p574_p6 = scmp.lt.s32.totalorder %s146_s5, %s572_s15 }
  0x1b   : > { %p569_p4 = pnand %p567_p3, %p555_p2  ;;  %p575_p7 = scmp.lt.s32.totalorder %s573_s16, %s566_s7 }
  0x1d   : > { %p570_p5 = pneg %p569_p4  ;;  %p576_p10 = por %p575_p7, %p574_p6 }
  0x1f   : > { %p577_p13 = pnand %p576_p10, %p570_p5 }
  0x21   : > { %580 = shalt.err (!%p577_p13)
}
  0x22   : > { %s696_s18 = smov 64   ;;  %s697_s19 = smov 4  }
  0x23   : > { %489 = dma.hbm_to_vmem [thread:$0]  (!%p790_p0), %s144_s3, 192, %s146_s5, %s134_s6, %s696_s18, %s696_s18, %s697_s19  }
  0x24   : > { %p177_p3 = scmp.lt.s32.totalorder %s693_s14, 3  ;;  %s477_s20 = smul.u32 96, %s784_s25 }
  0x25   : > { %s474_s27 = smul.u32 1536, %s689_s13  ;;  %s156_s15 = scalar_lea.sflag [#allocation6], %s784_s25 }
  0x26   : > { %p810_p4 = pnand %p462_p1, %p177_p3  ;;  %s159_s7 = scalar_lea.vmem [#allocation5], %s477_s20 }
  0x27   : > { %s168_s4 = scalar_lea.hbm %s934_s1, %s474_s27  ;;  %s169_s8 = sshll.u32 %s159_s7, 4  ;;  %s170_s8 = int_to_ptr.vmem [resolvable:$true] %s169_s8 }
  0x28   : > { %s594_s16 = scalar_lea.vmem %s170_s8, 1536  ;;  %s698_s3 = smov [#allocation5]  }
  0x29   : > { %p595_p5 = scmp.ne.s32.totalorder %s170_s8, %s594_s16  ;;  %s599_s5 = sshll.u32 %s698_s3, 4  ;;  %s600_s5 = int_to_ptr.vmem [resolvable:$false] %s599_s5 }
  0x2a   : > { %s601_s6 = scalar_lea.vmem %s600_s5, 3072  ;;  %p602_p1 = scmp.lt.s32.totalorder %s170_s8, %s600_s5 }
  0x2b   : > { %p597_p6 = pnand %p595_p5, %p555_p2  ;;  %p603_p10 = scmp.lt.s32.totalorder %s601_s6, %s594_s16 }
  0x2d   : > { %p598_p7 = pneg %p597_p6  ;;  %p604_p13 = por %p603_p10, %p602_p1 }
  0x2f   : > { %p605_p3 = pnand %p604_p13, %p598_p7 }
  0x31   : > { %608 = shalt.err (!%p605_p3)
}
  0x32   : > { %s699_s18 = smov 512   ;;  %s700_s19 = smov 32  }
  0x33   : > { %492 = dma.hbm_to_vmem [thread:$0]  (!%p790_p0), %s168_s4, 1536, %s170_s8, %s156_s15, %s699_s18, %s699_s18, %s700_s19  }
  0x34   : > { %181 = sbr.rel (%p810_p4) target bundleno = 91 (0x5b), region = 28  ;;  %s827_s25 = sand.u32 (!%p810_p4), 1, %s677_s10  }
  0x35   : > { %s478_s20 = smul.u32 (!%p810_p4), 12, %s827_s25  ;;  %s184_s27 = scalar_lea.sflag (!%p810_p4), [#allocation3], %s827_s25 }
  0x37   : > { %s831_s29 = scalar_lea.vmem (!%p810_p4), [#allocation2], %s478_s20 }
  0x39   : > { %660 = dma.done.wait (%p766_p8), %s184_s27, 192  }
  0x3a   : > { %662 = vsyncadd (%p766_p8), %s184_s27, 4294967104  ;;  %s479_s28 = smul.u32 96, %s827_s25  ;;  %s193_s26 = scalar_lea.sflag [#allocation6], %s827_s25 }
  0x3c   : > { %s841_s30 = scalar_lea.vmem [#allocation5], %s479_s28 }
  0x3d   : > { %664 = dma.done.wait (%p766_p8), %s193_s26, 1536  }
  0x3e   : > { %666 = vsyncadd (%p766_p8), %s193_s26, 4294965760  ;;  %v243_v0 = vlaneseq  ;;  %v225_v6 = vld [vmem:[%s841_s30] sm:$0xff]  ;;  %v237_v7 = vld [vmem:[%s831_s29] sm:$0xf]  ;;  %s475_s21 = smul.u32 1536, %s685_s12  ;;  %s862_s4 = scalar_lea.vmem [#allocation7], %s479_s28 }
  0x3f   : > { %v226_v8 = vld [vmem:[%s841_s30 + $0x8] sm:$0xff]  ;;  %v227_v11 = vld [vmem:[%s841_s30 + $0x10] sm:$0xff]  ;;  %v228_v13 = vld [vmem:[%s841_s30 + $0x18] sm:$0xff]  ;;  %s344_s7 = sshll.u32 %s862_s4, 4  ;;  %s328_s16 = scalar_lea.sflag [#allocation4], %s827_s25  ;;  %s872_s7 = int_to_ptr.vmem [resolvable:$true] %s344_s7 }
  0x40   : > { %v244_v1 = vshrl.u32 %v243_v0, 7  ;;  %v229_v15 = vld [vmem:[%s841_s30 + $0x20] sm:$0xff]  ;;  %v238_v16 = vld [vmem:[%s831_s29 + $0x4] sm:$0xf]  ;;  %v231_v18 = vld [vmem:[%s841_s30 + $0x30] sm:$0xff]  ;;  %s877_s15 = scalar_lea.hbm %s935_s2, %s475_s21  ;;  %s609_s3 = scalar_lea.vmem %s872_s7, 1536 }
  0x41   : > { %v230_v17 = vld [vmem:[%s841_s30 + $0x28] sm:$0xff]  ;;  %v232_v23 = vld [vmem:[%s841_s30 + $0x38] sm:$0xff]  ;;  %v233_v24 = vld [vmem:[%s841_s30 + $0x40] sm:$0xff]  ;;  %p610_p8 = scmp.ne.s32.totalorder %s872_s7, %s609_s3  ;;  %s701_s5 = smov [#allocation7]  }
  0x42   : > { %v245_v2 = vsub.s32 0, %v244_v1  ;;  %v249_v3 = vsub.s32 1, %v244_v1  ;;  %v253_v4 = vsub.s32 2, %v244_v1  ;;  %v257_v5 = vsub.s32 3, %v244_v1  ;;  %v239_v25 = vld [vmem:[%s831_s29 + $0x8] sm:$0xf] }
  0x43   : > { %v234_v30 = vld [vmem:[%s841_s30 + $0x48] sm:$0xff]  ;;  %v235_v31 = vld [vmem:[%s841_s30 + $0x50] sm:$0xff]  ;;  %v236_v32 = vld [vmem:[%s841_s30 + $0x58] sm:$0xff]  ;;  %p611_p0 = pnand %p610_p8, %p770_p9  ;;  %s613_s6 = sshll.u32 %s701_s5, 4  ;;  %s614_s6 = int_to_ptr.vmem [resolvable:$false] %s613_s6 }
  0x44   : > { %v246_v9 = vrot.slane %v237_v7, %v245_v2  ;;  %v250_v10 = vrot.slane %v237_v7, %v249_v3  ;;  %v254_v12 = vrot.slane %v237_v7, %v253_v4  ;;  %v258_v14 = vrot.slane %v237_v7, %v257_v5  ;;  %s615_s18 = scalar_lea.vmem %s614_s6, 3072  ;;  %p616_p4 = scmp.lt.s32.totalorder %s872_s7, %s614_s6 }
  0x45   : > { %v262_v26 = vrot.slane %v238_v16, %v245_v2  ;;  %v266_v27 = vrot.slane %v238_v16, %v249_v3  ;;  %v270_v28 = vrot.slane %v238_v16, %v253_v4  ;;  %v274_v29 = vrot.slane %v238_v16, %v257_v5  ;;  %p612_p2 = pneg %p611_p0  ;;  %p617_p5 = scmp.lt.s32.totalorder %s615_s18, %s609_s3 }
  0x46   : > { %v303_v19 = vadd.f32 %v246_v9, %v225_v6  ;;  %v304_v20 = vadd.f32 %v250_v10, %v226_v8  ;;  %v305_v21 = vadd.f32 %v254_v12, %v227_v11  ;;  %v306_v22 = vadd.f32 %v258_v14, %v228_v13 }
  0x47   : > { %v278_v33 = vrot.slane %v239_v25, %v245_v2  ;;  %v282_v34 = vrot.slane %v239_v25, %v249_v3  ;;  %v286_v35 = vrot.slane %v239_v25, %v253_v4  ;;  %v290_v36 = vrot.slane %v239_v25, %v257_v5  ;;  %p618_p6 = por %p617_p5, %p616_p4 }
  0x48   : > { %315 = vst [vmem:[%s862_s4] sm:$0xff] %v303_v19  ;;  %316 = vst [vmem:[%s862_s4 + $0x8] sm:$0xff] %v304_v20  ;;  %v307_v37 = vadd.f32 %v262_v26, %v229_v15  ;;  %v308_v38 = vadd.f32 %v266_v27, %v230_v17  ;;  %v309_v39 = vadd.f32 %v270_v28, %v231_v18 }
  0x49   : > { %317 = vst [vmem:[%s862_s4 + $0x10] sm:$0xff] %v305_v21  ;;  %318 = vst [vmem:[%s862_s4 + $0x18] sm:$0xff] %v306_v22  ;;  %v310_v40 = vadd.f32 %v274_v29, %v232_v23  ;;  %v311_v41 = vadd.f32 %v278_v33, %v233_v24  ;;  %v312_v42 = vadd.f32 %v282_v34, %v234_v30  ;;  %p619_p7 = pnand %p618_p6, %p612_p2 }
  0x4a   : > { %v313_v43 = vadd.f32 %v286_v35, %v235_v31  ;;  %v314_v44 = vadd.f32 %v290_v36, %v236_v32  ;;  %319 = vst [vmem:[%s862_s4 + $0x20] sm:$0xff] %v307_v37  ;;  %320 = vst [vmem:[%s862_s4 + $0x28] sm:$0xff] %v308_v38 }
  0x4b   : > { %321 = vst [vmem:[%s862_s4 + $0x30] sm:$0xff] %v309_v39  ;;  %322 = vst [vmem:[%s862_s4 + $0x38] sm:$0xff] %v310_v40 }
  0x4c   : > { %323 = vst [vmem:[%s862_s4 + $0x40] sm:$0xff] %v311_v41  ;;  %324 = vst [vmem:[%s862_s4 + $0x48] sm:$0xff] %v312_v42 }
  0x4d   : > { %325 = vst [vmem:[%s862_s4 + $0x50] sm:$0xff] %v313_v43  ;;  %326 = vst [vmem:[%s862_s4 + $0x58] sm:$0xff] %v314_v44 }
  0x4e   : > { %622 = shalt.err (!%p619_p7)
}
  0x4f   : > { %s623_s19 = scalar_lea.hbm %s877_s15, 1536  ;;  %s627_s29 = scalar_lea.hbm %s935_s2, 3072 }
  0x50   : > { %p624_p1 = scmp.ne.s32.totalorder %s877_s15, %s623_s19  ;;  %p628_p3 = scmp.lt.s32.totalorder %s877_s15, %s935_s2 }
  0x51   : > { %p629_p8 = scmp.lt.s32.totalorder %s627_s29, %s623_s19 }
  0x52   : > { %p625_p10 = pnand %p624_p1, %p770_p9 }
  0x53   : > { %p630_p0 = por %p629_p8, %p628_p3 }
  0x54   : > { %p626_p13 = pneg %p625_p10 }
  0x56   : > { %p631_p2 = pnand %p630_p0, %p626_p13 }
  0x58   : > { %634 = shalt.err (!%p631_p2)
}
  0x59   : > { %s702_s30 = smov 512   ;;  %s703_s21 = smov 32  }
  0x5a   : > { %484 = dma.vmem_to_hbm [thread:$0]  (%p770_p9), %s872_s7, 1536, %s877_s15, %s328_s16, %s702_s30, %s702_s30, %s703_s21  }
  0x5b PF: > { %s359_s4 = sand.u32 1, %s673_s9   ;;  %p494_p4 = pnand %p457_p12, %p777_p11 }
  0x5c   : > { %s360_s12 = scalar_lea.sflag [#allocation4], %s359_s4 }
  0x5d   : > { %p495_p5 = pneg %p494_p4 }
  0x5f   : > { %668 = dma.done.wait (%p495_p5), %s360_s12, 1536  }
  0x60   : > { %670 = vsyncadd (%p495_p5), %s360_s12, 4294965760  ;;  %s21_s14 = sadd.s32 1, %s693_s14   ;;  %s942_s9 = smov %s677_s10 }
  0x61   : > { %p18_p6 = scmp.ge.s32.totalorder %s21_s14, 4   ;;  %s943_s10 = smov %s681_s11 }
  0x62   : > { %s944_s11 = smov %s775_s23  ;;  %s945_s12 = smov %s689_s13 }
  0x63   : > { %s946_s13 = smov %s948_s17  ;;  %20 = sbr.rel (!%p18_p6) target bundleno = 8 (0x8), region = 86 }
  0x68   :  { %365 = vsyncpa [#allocation3], 1 }
  0x69   :  { %367 = vsyncpa [#allocation3 + $0x1], 1 }
  0x6a   :  { %368 = vsyncpa [#allocation6], 1 }
  0x6b   :  { %370 = vsyncpa [#allocation6 + $0x1], 1 }
  0x6c   :  { %371 = vsyncpa [#allocation4], 1 }
  0x6d   :  { %373 = vsyncpa [#allocation4 + $0x1], 1 }

</bundles_post_ra>
